<compile_context>
chip_gen: v6e
topology: v6e:2x2x1
jax: 0.10.0
libtpu: 0.0.40
codegen_flags: <defaults>
</compile_context>

<pallas_src>
import jax
import jax.numpy as jnp
from jax.experimental import pallas as pl
from jax.experimental.pallas import tpu as pltpu

LANE = 128   # vreg lane width


def _round_up(x: int, m: int) -> int:
    return (x + m - 1) // m * m


# ---------------------------------------------------------------------------
# Kernel
# ---------------------------------------------------------------------------
def mlp_kernel(x_ref, w1_ref, b1_ref, w2_ref, b2_ref, w3_ref, b3_ref, o_ref):
    # Cast x tile to bf16 in-kernel (no wrapper pad/cast pass over HBM).
    x = x_ref[...].astype(jnp.bfloat16)

    # Layer 1: Linear (bf16 operands -> f32 MXU accumulate) + bias + ReLU.
    h = jnp.dot(x, w1_ref[...], preferred_element_type=jnp.float32)
    h = jnp.maximum(h + b1_ref[...], 0.0)

    # Layer 2: Linear + bias.
    h = jnp.dot(h.astype(jnp.bfloat16), w2_ref[...],
                preferred_element_type=jnp.float32)
    h = h + b2_ref[...]

    # Dropout(p=0.4): identity in eval/inference mode.
    # TODO(synk): training-mode dropout would use pltpu.prng_seed +
    # pltpu.prng_random_bits and a 1/(1-p) rescale.
    h = jnp.maximum(h, 0.0)

    # Layer 3: Linear (logits); 128-wide padded output keeps the store lane-dense.
    out = jnp.dot(h.astype(jnp.bfloat16), w3_ref[...],
                  preferred_element_type=jnp.float32)
    o_ref[...] = (out + b3_ref[...]).astype(o_ref.dtype)


# ---------------------------------------------------------------------------
# Batch tiling heuristic
# ---------------------------------------------------------------------------
def _choose_batch_tiling(B: int, *, max_tile: int = 2048):
    """Returns (tile_b, num_tiles, b_pad).

    - tiles rounded to 16 rows (bf16 sublane packing of the casted x),
    - grid forced even and >=2 (>=4 for large B) so v7x's two TensorCores both
      get work and the input/output pipeline has tiles to overlap,
    - tile capped at max_tile rows; ragged B pads at most one 16-row sliver per
      tile instead of a whole extra tile.
    """
    b16 = _round_up(B, 16)
    if b16 < 32:                     # tiny batch: single tile is all there is
        return b16, 1, b16
    target = 4 if b16 >= 1024 else 2
    n = max(target, pl.cdiv(b16, max_tile))
    n = min(n, b16 // 16)
    if n > 1 and n % 2:              # even grid => both v7x cores stay busy
        n += 1
    tile = _round_up(pl.cdiv(b16, n), 16)
    n = pl.cdiv(b16, tile)
    return tile, n, n * tile


# ---------------------------------------------------------------------------
# Wrapper
# ---------------------------------------------------------------------------
def neural_network_forward(x, padded_params, *, training=False):
    """x: [B, in_features] float32.  padded_params: dict from pad_and_cast_params."""
    assert not training, "training-mode dropout not implemented (eval forward only)"

    w1, b1 = padded_params["w1"], padded_params["b1"]
    w2, b2 = padded_params["w2"], padded_params["b2"]
    w3, b3 = padded_params["w3"], padded_params["b3"]
    in_f, h1, h2, out_f = padded_params["true_dims"]

    B, in_features = x.shape
    assert in_features == in_f
    in_k, h1_p = w1.shape            # in_k == true in_features (unpadded K)
    h2_p = w2.shape[1]
    out_p = w3.shape[1]

    tile_b, n_tiles, b_pad = _choose_batch_tiling(B)
    if b_pad != B:                   # row padding only; no lane padding, no cast
        x = jnp.pad(x, ((0, b_pad - B), (0, 0)))

    # Advisory cost estimate from true dims / actual HBM traffic.
    flops = 2 * B * (in_f * h1 + h1 * h2 + h2 * out_f)
    bytes_accessed = (
        b_pad * in_f * 4                                           # x read (f32)
        + 2 * (in_k * h1_p + h1_p * h2_p + h2_p * out_p)           # bf16 weights
        + 4 * (h1_p + h2_p + out_p)                                # f32 biases
        + b_pad * out_p * 4                                        # output write
    )

    out_full = pl.pallas_call(
        mlp_kernel,
        out_shape=jax.ShapeDtypeStruct((b_pad, out_p), jnp.float32),
        grid=(n_tiles,),
        in_specs=[
            pl.BlockSpec((tile_b, in_f), lambda i: (i, 0)),   # x: batch-tiled, unpadded K
            pl.BlockSpec((in_k, h1_p), lambda i: (0, 0)),     # weights/biases VMEM-resident
            pl.BlockSpec((1, h1_p), lambda i: (0, 0)),
            pl.BlockSpec((h1_p, h2_p), lambda i: (0, 0)),
            pl.BlockSpec((1, h2_p), lambda i: (0, 0)),
            pl.BlockSpec((h2_p, out_p), lambda i: (0, 0)),
            pl.BlockSpec((1, out_p), lambda i: (0, 0)),
        ],
        out_specs=pl.BlockSpec((tile_b, out_p), lambda i: (i, 0)),
        compiler_params=pltpu.CompilerParams(
            dimension_semantics=("parallel",),
        ),
        cost_estimate=pl.CostEstimate(
            flops=flops, transcendentals=0, bytes_accessed=bytes_accessed),
    )(x, w1, b1, w2, b2, w3, b3)

    return out_full[:B, :out_f]


# ---------------------------------------------------------------------------
# Params
# ---------------------------------------------------------------------------
def init_params(key, input_dim, h1, h2, output_dim):
    """nn.Linear-style init (uniform +-1/sqrt(fan_in)); weights stored [in, out]."""
    ks = jax.random.split(key, 6)

    def lin(kw, kb, fan_in, fan_out):
        bound = 1.0 / jnp.sqrt(fan_in)
        w = jax.random.uniform(kw, (fan_in, fan_out), jnp.float32, -bound, bound)
        b = jax.random.uniform(kb, (1, fan_out), jnp.float32, -bound, bound)
        return w, b

    w1, b1 = lin(ks[0], ks[1], input_dim, h1)
    w2, b2 = lin(ks[2], ks[3], h1, h2)
    w3, b3 = lin(ks[4], ks[5], h2, output_dim)
    return {"w1": w1, "b1": b1, "w2": w2, "b2": b2, "w3": w3, "b3": b3}


def pad_and_cast_params(params):
    """Cast weights to bf16 (MXU operand dtype) and zero-pad feature dims to 128
    lanes -- but only the *output* dims plus the chained input dims of w2/w3
    (w1 keeps its true, unpadded input dim so x needs no lane padding).  Zero
    padding is mathematically exact.  Biases stay f32 for the epilogue."""
    in_f, h1 = params["w1"].shape
    h2 = params["w2"].shape[1]
    out_f = params["w3"].shape[1]
    h1_p, h2_p, out_p = _round_up(h1, LANE), _round_up(h2, LANE), _round_up(out_f, LANE)

    def pad_w(w, ip, op):
        i, o = w.shape
        return jnp.zeros((ip, op), jnp.bfloat16).at[:i, :o].set(w.astype(jnp.bfloat16))

    def pad_b(b, op):
        return jnp.zeros((1, op), jnp.float32).at[:, :b.shape[1]].set(b)

    return {
        "w1": pad_w(params["w1"], in_f, h1_p), "b1": pad_b(params["b1"], h1_p),
        "w2": pad_w(params["w2"], h1_p, h2_p), "b2": pad_b(params["b2"], h2_p),
        "w3": pad_w(params["w3"], h2_p, out_p), "b3": pad_b(params["b3"], out_p),
        "true_dims": (in_f, h1, h2, out_f),
    }


if __name__ == "__main__":
    config = {"input": 32, "h1": 64, "h2": 32, "output": 16}

    key = jax.random.PRNGKey(0)
    k_x, k_x2, k_x3, k_p = jax.random.split(key, 4)

    params = init_params(k_p, config["input"], config["h1"],
                         config["h2"], config["output"])
    padded = pad_and_cast_params(params)

    def ref_forward(x):  # pure-JAX f32 reference (dropout is identity in eval)
        h = jnp.maximum(x @ params["w1"] + params["b1"], 0.0)
        h = jnp.maximum(h @ params["w2"] + params["b2"], 0.0)
        return h @ params["w3"] + params["b3"]

    # Small batch (single tile, batch rows padded 8 -> 16).
    x_small = jax.random.normal(k_x, (8, config["input"]), dtype=jnp.float32)
    y_small = neural_network_forward(x_small, padded)
    jax.block_until_ready(y_small)
    assert y_small.shape == (8, config["output"])
    assert jnp.allclose(y_small, ref_forward(x_small), atol=5e-2, rtol=5e-2)

    # Larger batch: grid of 2 tiles ("parallel" axis -> both v7x TensorCores).
    x_big = jax.random.normal(k_x2, (512, config["input"]), dtype=jnp.float32)
    y_big = neural_network_forward(x_big, padded)
    jax.block_until_ready(y_big)
    assert y_big.shape == (512, config["output"])
    assert jnp.allclose(y_big, ref_forward(x_big), atol=5e-2, rtol=5e-2)

    # Ragged batch: pads only to the next 16-row/tile boundary, not a full tile.
    x_rag = jax.random.normal(k_x3, (300, config["input"]), dtype=jnp.float32)
    y_rag = neural_network_forward(x_rag, padded)
    jax.block_until_ready(y_rag)
    assert y_rag.shape == (300, config["output"])
    assert jnp.allclose(y_rag, ref_forward(x_rag), atol=5e-2, rtol=5e-2)

    print("KERNEL_OK")
</pallas_src>

<mosaic_0001>
module attributes {stable_mosaic.version = 11 : i64} {
  func.func @mlp_kernel(%arg0: i32, %arg1: memref<16x32xf32, #tpu.memory_space<vmem>>, %arg2: memref<32x128xbf16, #tpu.memory_space<vmem>>, %arg3: memref<1x128xf32, #tpu.memory_space<vmem>>, %arg4: memref<128x128xbf16, #tpu.memory_space<vmem>>, %arg5: memref<1x128xf32, #tpu.memory_space<vmem>>, %arg6: memref<128x128xbf16, #tpu.memory_space<vmem>>, %arg7: memref<1x128xf32, #tpu.memory_space<vmem>>, %arg8: memref<16x128xf32, #tpu.memory_space<vmem>>) attributes {dimension_semantics = [#tpu.dimension_semantics<parallel>], iteration_bounds = array<i64: 1>, scalar_prefetch = 0 : i64, scratch_operands = 0 : i64, tpu.core_type = #tpu.core_type<tc>, window_params = [{transform_indices = @transform_0, window_bounds = array<i64: 16, 32>}, {pipeline_mode = #tpu.pipeline_mode<synchronous>, transform_indices = @transform_1, window_bounds = array<i64: 32, 128>}, {pipeline_mode = #tpu.pipeline_mode<synchronous>, transform_indices = @transform_2, window_bounds = array<i64: 1, 128>}, {pipeline_mode = #tpu.pipeline_mode<synchronous>, transform_indices = @transform_3, window_bounds = array<i64: 128, 128>}, {pipeline_mode = #tpu.pipeline_mode<synchronous>, transform_indices = @transform_4, window_bounds = array<i64: 1, 128>}, {pipeline_mode = #tpu.pipeline_mode<synchronous>, transform_indices = @transform_5, window_bounds = array<i64: 128, 128>}, {pipeline_mode = #tpu.pipeline_mode<synchronous>, transform_indices = @transform_6, window_bounds = array<i64: 1, 128>}, {transform_indices = @transform_7, window_bounds = array<i64: 16, 128>}]} {
    %c0 = arith.constant 0 : index
    %c0_0 = arith.constant 0 : index
    %0 = vector.load %arg1[%c0, %c0_0] : memref<16x32xf32, #tpu.memory_space<vmem>>, vector<16x32xf32>
    %1 = arith.truncf %0 : vector<16x32xf32> to vector<16x32xbf16>
    %c0_1 = arith.constant 0 : index
    %c0_2 = arith.constant 0 : index
    %2 = vector.load %arg2[%c0_1, %c0_2] : memref<32x128xbf16, #tpu.memory_space<vmem>>, vector<32x128xbf16>
    %cst = arith.constant dense<0.000000e+00> : vector<16x128xf32>
    %3 = tpu.matmul %1, %2, %cst {dimension_numbers = #tpu.dot_dimension_numbers<[1], [0], [0], [1], [0, 0, 1, 1], [], []>} : vector<16x32xbf16>, vector<32x128xbf16>, vector<16x128xf32> -> vector<16x128xf32>
    %c0_3 = arith.constant 0 : index
    %c0_4 = arith.constant 0 : index
    %4 = vector.load %arg3[%c0_3, %c0_4] : memref<1x128xf32, #tpu.memory_space<vmem>>, vector<1x128xf32>
    %5 = vector.broadcast %4 : vector<1x128xf32> to vector<16x128xf32>
    %6 = arith.addf %3, %5 : vector<16x128xf32>
    %cst_5 = arith.constant 0.000000e+00 : f32
    %7 = vector.broadcast %cst_5 : f32 to vector<16x128xf32>
    %8 = arith.maximumf %6, %7 : vector<16x128xf32>
    %9 = arith.truncf %8 : vector<16x128xf32> to vector<16x128xbf16>
    %c0_6 = arith.constant 0 : index
    %c0_7 = arith.constant 0 : index
    %10 = vector.load %arg4[%c0_6, %c0_7] : memref<128x128xbf16, #tpu.memory_space<vmem>>, vector<128x128xbf16>
    %cst_8 = arith.constant dense<0.000000e+00> : vector<16x128xf32>
    %11 = tpu.matmul %9, %10, %cst_8 {dimension_numbers = #tpu.dot_dimension_numbers<[1], [0], [0], [1], [0, 0, 1, 1], [], []>} : vector<16x128xbf16>, vector<128x128xbf16>, vector<16x128xf32> -> vector<16x128xf32>
    %c0_9 = arith.constant 0 : index
    %c0_10 = arith.constant 0 : index
    %12 = vector.load %arg5[%c0_9, %c0_10] : memref<1x128xf32, #tpu.memory_space<vmem>>, vector<1x128xf32>
    %13 = vector.broadcast %12 : vector<1x128xf32> to vector<16x128xf32>
    %14 = arith.addf %11, %13 : vector<16x128xf32>
    %cst_11 = arith.constant 0.000000e+00 : f32
    %15 = vector.broadcast %cst_11 : f32 to vector<16x128xf32>
    %16 = arith.maximumf %14, %15 : vector<16x128xf32>
    %17 = arith.truncf %16 : vector<16x128xf32> to vector<16x128xbf16>
    %c0_12 = arith.constant 0 : index
    %c0_13 = arith.constant 0 : index
    %18 = vector.load %arg6[%c0_12, %c0_13] : memref<128x128xbf16, #tpu.memory_space<vmem>>, vector<128x128xbf16>
    %cst_14 = arith.constant dense<0.000000e+00> : vector<16x128xf32>
    %19 = tpu.matmul %17, %18, %cst_14 {dimension_numbers = #tpu.dot_dimension_numbers<[1], [0], [0], [1], [0, 0, 1, 1], [], []>} : vector<16x128xbf16>, vector<128x128xbf16>, vector<16x128xf32> -> vector<16x128xf32>
    %c0_15 = arith.constant 0 : index
    %c0_16 = arith.constant 0 : index
    %20 = vector.load %arg7[%c0_15, %c0_16] : memref<1x128xf32, #tpu.memory_space<vmem>>, vector<1x128xf32>
    %21 = vector.broadcast %20 : vector<1x128xf32> to vector<16x128xf32>
    %22 = arith.addf %19, %21 : vector<16x128xf32>
    %c0_17 = arith.constant 0 : index
    %c0_18 = arith.constant 0 : index
    %23 = vector.load %arg8[%c0_17, %c0_18] : memref<16x128xf32, #tpu.memory_space<vmem>>, vector<16x128xf32>
    tpu.vector_store %arg8[%c0_17, %c0_18], %22 {strides = array<i32>} : memref<16x128xf32, #tpu.memory_space<vmem>>, vector<16x128xf32>,
    return
  }
  func.func @transform_0(%arg0: i32) -> (i32, i32) {
    %c0_i32 = arith.constant 0 : i32
    %c0_i32_0 = arith.constant 0 : i32
    return %arg0, %c0_i32 : i32, i32
  }
  func.func @transform_1(%arg0: i32) -> (i32, i32) {
    %c0_i32 = arith.constant 0 : i32
    %c0_i32_0 = arith.constant 0 : i32
    %c0_i32_1 = arith.constant 0 : i32
    return %c0_i32, %c0_i32_0 : i32, i32
  }
  func.func @transform_2(%arg0: i32) -> (i32, i32) {
    %c0_i32 = arith.constant 0 : i32
    %c0_i32_0 = arith.constant 0 : i32
    %c0_i32_1 = arith.constant 0 : i32
    return %c0_i32, %c0_i32_0 : i32, i32
  }
  func.func @transform_3(%arg0: i32) -> (i32, i32) {
    %c0_i32 = arith.constant 0 : i32
    %c0_i32_0 = arith.constant 0 : i32
    %c0_i32_1 = arith.constant 0 : i32
    return %c0_i32, %c0_i32_0 : i32, i32
  }
  func.func @transform_4(%arg0: i32) -> (i32, i32) {
    %c0_i32 = arith.constant 0 : i32
    %c0_i32_0 = arith.constant 0 : i32
    %c0_i32_1 = arith.constant 0 : i32
    return %c0_i32, %c0_i32_0 : i32, i32
  }
  func.func @transform_5(%arg0: i32) -> (i32, i32) {
    %c0_i32 = arith.constant 0 : i32
    %c0_i32_0 = arith.constant 0 : i32
    %c0_i32_1 = arith.constant 0 : i32
    return %c0_i32, %c0_i32_0 : i32, i32
  }
  func.func @transform_6(%arg0: i32) -> (i32, i32) {
    %c0_i32 = arith.constant 0 : i32
    %c0_i32_0 = arith.constant 0 : i32
    %c0_i32_1 = arith.constant 0 : i32
    return %c0_i32, %c0_i32_0 : i32, i32
  }
  func.func @transform_7(%arg0: i32) -> (i32, i32) {
    %c0_i32 = arith.constant 0 : i32
    %c0_i32_0 = arith.constant 0 : i32
    return %arg0, %c0_i32 : i32, i32
  }
}

</mosaic_0001>

<bundles_post_ra>
// kernel: tpu_custom_call.1
= control target key start
LH: loop header
LB: loop body
LE: loop exit
PB: predicated region body
PF: predicated region fallthrough
CT: control target
= control target key end

     0   :  { %12 = vsyncpa [#allocation3], 0  ;;  %s747_s0 = inlined_call_operand.hbm [shape: f32[16,32], index: 0, kind: input, shape index: {}]   ;;  %s748_s1 = inlined_call_operand.hbm [shape: bf16[32,128], index: 1, kind: input, shape index: {}]   ;;  %s749_s2 = inlined_call_operand.vmem [shape: f32[1,128], index: 2, kind: input, shape index: {}]   ;;  %s750_s3 = inlined_call_operand.hbm [shape: bf16[128,128], index: 3, kind: input, shape index: {}]   ;;  %s751_s4 = inlined_call_operand.vmem [shape: f32[1,128], index: 4, kind: input, shape index: {}]   ;;  %s752_s5 = inlined_call_operand.hbm [shape: bf16[128,128], index: 5, kind: input, shape index: {}]   ;;  %s753_s6 = inlined_call_operand.vmem [shape: f32[1,128], index: 6, kind: input, shape index: {}]   ;;  %s754_s7 = inlined_call_operand.hbm [shape: f32[16,128], index: 7, kind: output, shape index: {}]  }
   0x1   :  { %13 = vsyncpa [#allocation6], 0 }
   0x2   :  { %14 = vsyncpa [#allocation9], 0 }
   0x3   :  { %15 = vsyncpa [#allocation4], 0  ;;  %s633_s24 = smov [#allocation5]  }
   0x4   :  { %s33_s25 = sshll.u32 %s633_s24, 4  ;;  %s34_s25 = int_to_ptr.vmem [resolvable:$true] %s33_s25 }
   0x5   :  { %s533_s26 = scalar_lea.vmem %s34_s25, 256  ;;  %p538_p1 = scmp.lt.s32.totalorder %s34_s25, %s34_s25 }
   0x6   :  { %p534_p0 = scmp.ne.s32.totalorder %s34_s25, %s533_s26  ;;  %p539_p2 = scmp.lt.s32.totalorder %s533_s26, %s533_s26 }
   0x8   :  { %p540_p3 = por %p539_p2, %p538_p1 }
   0xa   :  { %p541_p4 = pnand %p540_p3, %p534_p0 }
   0xc   :  { %544 = shalt.err (!%p541_p4)
}
   0xd   :  { %s634_s27 = smov 64   ;;  %s635_s28 = smov 4  }
   0xe   :  { %39 = dma.hbm_to_vmem [thread:$0]  %s748_s1, 256, %s34_s25, [#allocation6], %s634_s27, %s634_s27, %s635_s28  }
   0xf   :  { %s636_s8 = smov [#allocation2]  }
  0x10   :  { %s21_s9 = sshll.u32 %s636_s8, 4  ;;  %s22_s9 = int_to_ptr.vmem [resolvable:$true] %s21_s9 }
  0x11   :  { %s553_s10 = scalar_lea.vmem %s22_s9, 256  ;;  %p558_p6 = scmp.lt.s32.totalorder %s22_s9, %s22_s9 }
  0x12   :  { %p554_p5 = scmp.ne.s32.totalorder %s22_s9, %s553_s10  ;;  %p559_p7 = scmp.lt.s32.totalorder %s553_s10, %s553_s10 }
  0x14   :  { %p560_p8 = por %p559_p7, %p558_p6 }
  0x16   :  { %p561_p9 = pnand %p560_p8, %p554_p5 }
  0x18   :  { %564 = shalt.err (!%p561_p9)
}
  0x19   :  { %s637_s11 = smov 128   ;;  %s638_s12 = smov 8  }
  0x1a   :  { %27 = dma.hbm_to_vmem [thread:$0]  %s747_s0, 256, %s22_s9, [#allocation3], %s637_s11, %s637_s11, %s638_s12  }
  0x1b   :  { %s639_s1 = smov [#allocation7]   ;;  %s640_s16 = smov [#allocation8]  }
  0x1c   :  { %s47_s15 = sshll.u32 %s639_s1, 4  ;;  %s61_s17 = sshll.u32 %s640_s16, 4  ;;  %s48_s15 = int_to_ptr.vmem [resolvable:$true] %s47_s15  ;;  %s62_s17 = int_to_ptr.vmem [resolvable:$true] %s61_s17 }
  0x1d   :  { %s573_s18 = scalar_lea.vmem %s48_s15, 1024  ;;  %p578_p11 = scmp.lt.s32.totalorder %s48_s15, %s48_s15 }
  0x1e   :  { %p574_p10 = scmp.ne.s32.totalorder %s48_s15, %s573_s18  ;;  %p579_p12 = scmp.lt.s32.totalorder %s573_s18, %s573_s18 }
  0x20   :  { %p580_p13 = por %p579_p12, %p578_p11 }
  0x22   :  { %p581_p0 = pnand %p580_p13, %p574_p10 }
  0x24   :  { %584 = shalt.err (!%p581_p0)
}
  0x25   :  { %53 = dma.hbm_to_vmem [thread:$0]  %s750_s3, 1024, %s48_s15, [#allocation6], %s634_s27, %s634_s27, %s635_s28  }
  0x26   :  { %s593_s0 = scalar_lea.vmem %s62_s17, 1024  ;;  %p598_p2 = scmp.lt.s32.totalorder %s62_s17, %s62_s17 }
  0x27   :  { %p594_p1 = scmp.ne.s32.totalorder %s62_s17, %s593_s0  ;;  %p599_p3 = scmp.lt.s32.totalorder %s593_s0, %s593_s0 }
  0x29   :  { %p600_p4 = por %p599_p3, %p598_p2 }
  0x2b   :  { %p601_p5 = pnand %p600_p4, %p594_p1 }
  0x2d   :  { %604 = shalt.err (!%p601_p5)
}
  0x2e   :  { %67 = dma.hbm_to_vmem [thread:$0]  %s752_s5, 1024, %s62_s17, [#allocation9], %s634_s27, %s634_s27, %s635_s28  }
  0x2f   :  { %625 = dma.done.wait [#allocation3], 256  }
  0x30   :  { %626 = vsyncadd [#allocation3], 4294967040 }
  0x31   :  { %627 = dma.done.wait [#allocation6], 1280  }
  0x32   :  { %628 = vsyncadd [#allocation6], 4294966016 }
  0x33   :  { %629 = dma.done.wait [#allocation9], 1024  }
  0x34   :  { %630 = vsyncadd [#allocation9], 4294966272  ;;  %v641_v0 = vmov 0.0   ;;  %vm642_vm0 = vmmov 0   ;;  %v507_v1 = vld [vmem:[#allocation5 + $0x8] sm:$0xff]   ;;  %v508_v2 = vld [vmem:[#allocation5] sm:$0xff]  }
  0x35   :  { %448 = vmatprep.subr.bf16.mxu0 %v641_v0  ;;  %452 = vmatprep.mubr.msk.bf16.mxu0 %vm642_vm0, %v641_v0  ;;  %v83_v3 = vld [vmem:[#allocation2] sm:$0xff]  ;;  %v84_v4 = vld [vmem:[#allocation2 + $0x8] sm:$0xff]  ;;  %v509_v5 = vld [vmem:[#allocation7 + $0x38] sm:$0xff]   ;;  %vm109_vm1 = vcmask 261120   ;;  %s643_s26 = smov [#allocation10]  }
  0x36   :  { %456 = vmatprep.subr.bf16.mxu1 %v641_v0  ;;  %472 = vmatprep.mubr.msk.bf16.mxu1 %vm642_vm0, %v641_v0  ;;  %v85_v6 = vpack.c.bf16 %v84_v4, %v83_v3  ;;  %v510_v7 = vld [vmem:[#allocation7 + $0x30] sm:$0xff]   ;;  %v511_v8 = vld [vmem:[#allocation7 + $0x28] sm:$0xff]   ;;  %v512_v9 = vld [vmem:[#allocation7 + $0x20] sm:$0xff]   ;;  %s391_s27 = sshll.u32 %s643_s26, 4  ;;  %s392_s27 = int_to_ptr.vmem [resolvable:$true] %s391_s27 }
  0x37   :  { %449 = vmatpush3.bf16.msra.mxu0 %v507_v1  ;;  %457 = vmatpush3.bf16.msra.mxu1 %v509_v5  ;;  %v513_v10 = vld [vmem:[#allocation7 + $0x18] sm:$0xff]   ;;  %v514_v11 = vld [vmem:[#allocation7 + $0x10] sm:$0xff]   ;;  %v515_v12 = vld [vmem:[#allocation7 + $0x8] sm:$0xff]   ;;  %p610_p7 = scmp.lt.s32.totalorder %s392_s27, %s392_s27 }
  0x38   :  { %450 = vmatprep.subr.bf16.mxu0 %v641_v0  ;;  %458 = vmatprep.subr.bf16.mxu1 %v641_v0  ;;  %v516_v13 = vld [vmem:[#allocation7] sm:$0xff]   ;;  %v517_v14 = vld [vmem:[#allocation8 + $0x38] sm:$0xff]   ;;  %v518_v15 = vld [vmem:[#allocation8 + $0x30] sm:$0xff]  }
  0x39   :  { %v519_v16 = vld [vmem:[#allocation8 + $0x28] sm:$0xff]   ;;  %v520_v17 = vld [vmem:[#allocation8 + $0x20] sm:$0xff]   ;;  %v521_v18 = vld [vmem:[#allocation8 + $0x18] sm:$0xff]  }
  0x3a   :  { %v405_v19 = vld [vmem:[%s749_s2] ss:$0 sm:$0xff]  ;;  %v522_v29 = vld [vmem:[#allocation8 + $0x10] sm:$0xff]   ;;  %v523_v30 = vld [vmem:[#allocation8 + $0x8] sm:$0xff]  }
  0x3b   :  { %451 = vmatpush3.bf16.msra.mxu0 %v508_v2  ;;  %459 = vmatpush3.bf16.msra.mxu1 %v510_v7  ;;  %v524_v31 = vld [vmem:[#allocation8] sm:$0xff]  }
  0x3c   :  { %476 = vmatprep.subr.bf16.mxu0 %v641_v0  ;;  %460 = vmatprep.subr.bf16.mxu1 %v641_v0  ;;  %v409_v32 = vld [vmem:[%s751_s4] ss:$0 sm:$0xff]  ;;  %s605_s4 = scalar_lea.vmem %s392_s27, 256 }
  0x3d   :  { %v418_v42 = vld [vmem:[%s753_s6] ss:$0 sm:$0xff]  ;;  %p606_p6 = scmp.ne.s32.totalorder %s392_s27, %s605_s4  ;;  %p611_p8 = scmp.lt.s32.totalorder %s605_s4, %s605_s4 }
  0x3e   :  { %453 = vmatmul.mubr.msk.bf16.vlgmr.msra.gmra.mxu0 %vm109_vm1, %v85_v6 }
  0x3f   :  { %492 = vmatprep.mubr.msk.bf16.mxu0 %vm642_vm0, %v641_v0  ;;  %461 = vmatpush3.bf16.msra.mxu1 %v511_v8  ;;  %p612_p9 = por %p611_p8, %p610_p7 }
  0x40   :  { %462 = vmatprep.subr.bf16.mxu1 %v641_v0  ;;  %477 = vmatpush3.bf16.msra.mxu0 %v517_v14 }
  0x41   :  { %478 = vmatprep.subr.bf16.mxu0 %v641_v0  ;;  %p613_p10 = pnand %p612_p9, %p606_p6 }
  0x43   :  { %463 = vmatpush3.bf16.msra.mxu1 %v512_v9 }
  0x44   :  { %464 = vmatprep.subr.bf16.mxu1 %v641_v0  ;;  %479 = vmatpush3.bf16.msra.mxu0 %v518_v15 }
  0x45   :  { %480 = vmatprep.subr.bf16.mxu0 %v641_v0 }
  0x47   :  { %465 = vmatpush3.bf16.msra.mxu1 %v513_v10 }
  0x48   :  { %466 = vmatprep.subr.bf16.mxu1 %v641_v0  ;;  %481 = vmatpush3.bf16.msra.mxu0 %v519_v16 }
  0x49   :  { %482 = vmatprep.subr.bf16.mxu0 %v641_v0 }
  0x4b   :  { %467 = vmatpush3.bf16.msra.mxu1 %v514_v11 }
  0x4c   :  { %468 = vmatprep.subr.bf16.mxu1 %v641_v0  ;;  %483 = vmatpush3.bf16.msra.mxu0 %v520_v17 }
  0x4d   :  { %484 = vmatprep.subr.bf16.mxu0 %v641_v0 }
  0x4f   :  { %469 = vmatpush3.bf16.msra.mxu1 %v515_v12 }
  0x50   :  { %470 = vmatprep.subr.bf16.mxu1 %v641_v0  ;;  %485 = vmatpush3.bf16.msra.mxu0 %v521_v18 }
  0x51   :  { %486 = vmatprep.subr.bf16.mxu0 %v641_v0 }
  0x53   :  { %471 = vmatpush3.bf16.msra.mxu1 %v516_v13 }
  0x54   :  { %487 = vmatpush3.bf16.msra.mxu0 %v522_v29 }
  0x55   :  { %488 = vmatprep.subr.bf16.mxu0 %v641_v0 }
  0x58   :  { %489 = vmatpush3.bf16.msra.mxu0 %v523_v30 }
  0x59   :  { %490 = vmatprep.subr.bf16.mxu0 %v641_v0 }
  0x5c   :  { %491 = vmatpush3.bf16.msra.mxu0 %v524_v31 }
  0xfe   :  { %v147_v20 = vpop.f32.mrf.mxu0 }
  0xff   :  { %v148_v22 = vadd.f32 %v405_v19, %v147_v20 }
 0x100   :  { %v454_v21 = vpop.f32.mrf.mxu0 }
 0x101   :  { %v154_v26 = vmax.f32 %v148_v22, 0.0 }
 0x102   :  { %v150_v23 = vpop.f32.mrf.mxu0 }
 0x103   :  { %v151_v24 = vadd.f32 %v405_v19, %v150_v23 }
 0x104   :  { %v455_v25 = vpop.f32.mrf.mxu0 }
 0x105   :  { %v155_v27 = vmax.f32 %v151_v24, 0.0 }
 0x107   :  { %v156_v28 = vpack.c.bf16 %v155_v27, %v154_v26 }
 0x109   :  { %473 = vmatmul.mubr.bf16.vlgmr.msra.gmra.mxu1 %v156_v28 }
 0x1c9   :  { %v262_v33 = vpop.f32.mrf.mxu1 }
 0x1ca   :  { %v263_v35 = vadd.f32 %v409_v32, %v262_v33 }
 0x1cb   :  { %v474_v34 = vpop.f32.mrf.mxu1 }
 0x1cc   :  { %v269_v39 = vmax.f32 %v263_v35, 0.0 }
 0x1cd   :  { %v265_v36 = vpop.f32.mrf.mxu1 }
 0x1ce   :  { %v266_v37 = vadd.f32 %v409_v32, %v265_v36 }
 0x1cf   :  { %v475_v38 = vpop.f32.mrf.mxu1 }
 0x1d0   :  { %v270_v40 = vmax.f32 %v266_v37, 0.0 }
 0x1d2   :  { %v271_v41 = vpack.c.bf16 %v270_v40, %v269_v39 }
 0x1d4   :  { %493 = vmatmul.mubr.bf16.vlgmr.msra.gmra.mxu0 %v271_v41 }
 0x294   :  { %v377_v43 = vpop.f32.mrf.mxu0 }
 0x295   :  { %v378_v44 = vadd.f32 %v418_v42, %v377_v43 }
 0x296   :  { %v494_v45 = vpop.f32.mrf.mxu0 }
 0x297   :  { %384 = vst [vmem:[#allocation10] sm:$0xff] %v378_v44 }
 0x298   :  { %v380_v46 = vpop.f32.mrf.mxu0 }
 0x299   :  { %v381_v47 = vadd.f32 %v418_v42, %v380_v46 }
 0x29a   :  { %v495_v48 = vpop.f32.mrf.mxu0 }
 0x29b   :  { %385 = vst [vmem:[#allocation10 + $0x8] sm:$0xff] %v381_v47 }
 0x29c   :  { %616 = shalt.err (!%p613_p10)
}
 0x29d   :  { %397 = dma.vmem_to_hbm [thread:$0]  %s392_s27, 256, %s754_s7, [#allocation4], %s637_s11, %s637_s11, %s638_s12  }
 0x29e   :  { %631 = dma.done.wait [#allocation4], 256  }
 0x29f   :  { %632 = vsyncadd [#allocation4], 4294967040 }
 0x2a0   :  { %401 = vsyncpa [#allocation3], 1 }
 0x2a1   :  { %402 = vsyncpa [#allocation6], 1 }
 0x2a2   :  { %403 = vsyncpa [#allocation9], 1 }
 0x2a3   :  { %404 = vsyncpa [#allocation4], 1 }

</bundles_post_ra>
